<compile_context>
chip_gen: v7x
topology: tpu7x:2x2x1
jax: 0.10.0
libtpu: 0.0.40
codegen_flags: <defaults>
</compile_context>

<pallas_src>
import jax
import jax.numpy as jnp
from jax.experimental import pallas as pl
from jax.experimental.pallas import tpu as pltpu


_LANE = 128
_MAX_LANE_WIDTH = 32768                 # lane-dense slab width cap (elements)
_DEFAULT_TILE_BYTES = 4 * 1024 * 1024   # ~4 MiB tiles ~ HBM roofline


def _copy_kernel(x_ref, o_ref):
    # Identity copy of the current tile (the only "compute" a view has).
    o_ref[...] = x_ref[...]


def _vmem_capacity_bytes():
    """Physical VMEM of the local chip; conservative fallback if unqueryable."""
    try:
        return int(pltpu.get_tpu_info().vmem_capacity_bytes)
    except Exception:
        return 64 * 1024 * 1024         # v7x has the smallest VMEM (64 MiB)


def _resolve_shape(shape, numel):
    """Resolve a torch-style shape (possibly containing a single -1)."""
    shape = list(shape)
    if shape.count(-1) > 1:
        raise ValueError("only one -1 allowed in view shape")
    known = 1
    for s in shape:
        if s != -1:
            known *= s
    if -1 in shape:
        assert numel % known == 0, "view shape incompatible with input numel"
        shape[shape.index(-1)] = numel // known
    else:
        assert known == numel, "view shape incompatible with input numel"
    return tuple(shape)


def _sublane_multiple(itemsize):
    # One f32 vreg is [8,128]; sub-32-bit dtypes pack along sublanes
    # (bf16 -> 16 rows, int8/fp8 -> 32 rows per vreg).
    return max(8, 32 // max(1, int(itemsize)))


def _choose_tiling(numel, itemsize, tile_bytes):
    """Pick (width, rows, block_rows) for a lane/sublane-dense, unmasked tiling.

    Returns None when numel is not a multiple of 128 (caller handles).
    Prefers: widest lane slab, block <= tile_bytes, block_rows a multiple of
    the packed sublane count, and a grid that divides rows evenly.
    """
    if numel % _LANE != 0:
        return None
    sub = _sublane_multiple(itemsize)
    max_w = (min(numel, _MAX_LANE_WIDTH) // _LANE) * _LANE
    ragged = None
    w = max_w
    while w >= _LANE:
        if numel % w == 0:
            rows = numel // w
            cap_rows = max(1, tile_bytes // (w * itemsize))
            if rows <= cap_rows:
                return (w, rows, rows)          # single full-extent block
            br = (cap_rows // sub) * sub
            while br >= sub:
                if rows % br == 0:
                    return (w, rows, br)        # evenly dividing grid
                br -= sub
            if ragged is None and cap_rows >= sub:
                ragged = (w, rows, (cap_rows // sub) * sub)
        w -= _LANE
    if ragged is not None:                      # rare: no exact factorization
        return ragged
    return (_LANE, numel // _LANE, sub)         # last resort (tiny budgets)


def _copy_single_block(flat, vmem_cap):
    """Whole-array single-block copy (full-extent block: exempt from (8,128))."""
    numel = int(flat.size)
    dtype = flat.dtype
    itemsize = jnp.dtype(dtype).itemsize
    slab = jnp.reshape(flat, (1, numel))
    vmem_limit = min(vmem_cap,
                     max(32 * 1024 * 1024, 4 * numel * itemsize + (4 << 20)))
    out = pl.pallas_call(
        _copy_kernel,
        out_shape=jax.ShapeDtypeStruct((1, numel), dtype),
        compiler_params=pltpu.CompilerParams(vmem_limit_bytes=int(vmem_limit)),
    )(slab)
    return jnp.reshape(out, (-1,))


def _pallas_identity_copy(flat, *, tile_bytes=None):
    """Materializing identity copy of a 1D array via a Pallas kernel."""
    numel = int(flat.size)
    if numel == 0:
        return flat
    dtype = flat.dtype
    itemsize = jnp.dtype(dtype).itemsize

    vmem_cap = _vmem_capacity_bytes()
    if tile_bytes is None:
        tile_bytes = _DEFAULT_TILE_BYTES
    # 4 live buffers (in+out, double-buffered) must stay well inside VMEM.
    tile_bytes = max(1, min(tile_bytes, vmem_cap // 8))

    tiling = _choose_tiling(numel, itemsize, tile_bytes)
    if tiling is None:
        # numel not a multiple of 128.
        if numel * itemsize <= tile_bytes:
            return _copy_single_block(flat, vmem_cap)
        # Large non-aligned input: tiled copy of the 128-aligned prefix,
        # tiny single-block copy of the (<128-element) tail.
        prefix = (numel // _LANE) * _LANE
        head = _pallas_identity_copy(flat[:prefix], tile_bytes=tile_bytes)
        tail = _copy_single_block(flat[prefix:], vmem_cap)
        return jnp.concatenate([head, tail])

    width, rows, block_rows = tiling
    slab = jnp.reshape(flat, (rows, width))     # row-major -> ordering preserved
    block_bytes = block_rows * width * itemsize
    vmem_limit = min(vmem_cap,
                     max(32 * 1024 * 1024, 4 * block_bytes + (4 << 20)))

    out = pl.pallas_call(
        _copy_kernel,
        out_shape=jax.ShapeDtypeStruct((rows, width), dtype),
        grid_spec=pltpu.PrefetchScalarGridSpec(
            num_scalar_prefetch=0,
            grid=(pl.cdiv(rows, block_rows),),
            in_specs=[pl.BlockSpec((block_rows, width), lambda i: (i, 0))],
            out_specs=pl.BlockSpec((block_rows, width), lambda i: (i, 0)),
        ),
        compiler_params=pltpu.CompilerParams(
            dimension_semantics=("parallel",),
            vmem_limit_bytes=int(vmem_limit),
        ),
    )(slab)
    return jnp.reshape(out, (-1,))


class View:
    """JAX/Pallas equivalent of the PyTorch View module."""

    def __init__(self, shape, materialize=False, tile_byte_budget=None):
        self.shape = tuple(shape)
        self.materialize = materialize
        self.tile_byte_budget = tile_byte_budget

    def __call__(self, x):
        target = _resolve_shape(self.shape, x.size)
        if not self.materialize:
            # torch .view is metadata-only; jnp.reshape of a contiguous
            # row-major array is the exact equivalent (zero HBM traffic).
            return jnp.reshape(x, target)
        flat = jnp.reshape(x, (-1,))
        copied = _pallas_identity_copy(flat, tile_bytes=self.tile_byte_budget)
        return jnp.reshape(copied, target)


if __name__ == "__main__":
    key = jax.random.PRNGKey(0)
    k1, k2, k3, k4 = jax.random.split(key, 4)

    # 1) Canonical GNINA usage: flatten conv features before the FC head.
    x = jax.random.normal(k1, (2, 4, 16, 16), dtype=jnp.float32)
    ref = jnp.reshape(x, (2, 1024))
    y_view = jax.block_until_ready(View((-1, 4 * 16 * 16))(x))
    assert y_view.shape == (2, 1024) and y_view.dtype == x.dtype
    assert bool(jnp.array_equal(y_view, ref))

    # 2) Materializing Pallas copy: single full-extent lane-dense block.
    y_copy = jax.block_until_ready(View((-1, 1024), materialize=True)(x))
    assert y_copy.shape == (2, 1024) and y_copy.dtype == x.dtype
    assert bool(jnp.array_equal(y_copy, ref))

    # 3) Multi-block grid path (forced small tile budget) with bf16 sublane packing.
    xb = jax.random.normal(k2, (2, 16, 64, 64), dtype=jnp.bfloat16)
    refb = jnp.reshape(xb, (32, 4096))
    yb = jax.block_until_ready(
        View((32, -1), materialize=True, tile_byte_budget=64 * 1024)(xb))
    assert yb.shape == (32, 4096) and yb.dtype == jnp.bfloat16
    assert bool(jnp.array_equal(yb, refb))

    # 4) numel not divisible by 128: tiny single block, and prefix+tail split.
    xs = jax.random.normal(k3, (2, 3, 5), dtype=jnp.float32)       # 30 elems
    ys = jax.block_until_ready(View((6, 5), materialize=True)(xs))
    assert bool(jnp.array_equal(ys, jnp.reshape(xs, (6, 5))))

    xt = jax.random.normal(k4, (10, 100), dtype=jnp.float32)       # 1000 elems
    yt = jax.block_until_ready(
        View((-1,), materialize=True, tile_byte_budget=1024)(xt))
    assert bool(jnp.array_equal(yt, jnp.reshape(xt, (-1,))))

    print("KERNEL_OK")
</pallas_src>

<mosaic_0001>
module attributes {stable_mosaic.version = 11 : i64} {
  func.func @_copy_kernel(%arg0: i32, %arg1: memref<1x2048xf32, #tpu.memory_space<vmem>>, %arg2: memref<1x2048xf32, #tpu.memory_space<vmem>>) attributes {dimension_semantics = [#tpu.dimension_semantics<parallel>], iteration_bounds = array<i64: 1>, scalar_prefetch = 0 : i64, scratch_operands = 0 : i64, tpu.core_type = #tpu.core_type<tc>, window_params = [{transform_indices = @transform_0, window_bounds = array<i64: 1, 2048>}, {transform_indices = @transform_1, window_bounds = array<i64: 1, 2048>}]} {
    %c0 = arith.constant 0 : index
    %c0_0 = arith.constant 0 : index
    %0 = vector.load %arg1[%c0, %c0_0] : memref<1x2048xf32, #tpu.memory_space<vmem>>, vector<1x2048xf32>
    %c0_1 = arith.constant 0 : index
    %c0_2 = arith.constant 0 : index
    %1 = vector.load %arg2[%c0_1, %c0_2] : memref<1x2048xf32, #tpu.memory_space<vmem>>, vector<1x2048xf32>
    tpu.vector_store %arg2[%c0_1, %c0_2], %0 {strides = array<i32>} : memref<1x2048xf32, #tpu.memory_space<vmem>>, vector<1x2048xf32>,
    return
  }
  func.func @transform_0(%arg0: i32) -> (i32, i32) {
    %c0_i32 = arith.constant 0 : i32
    %c0_i32_0 = arith.constant 0 : i32
    return %arg0, %c0_i32 : i32, i32
  }
  func.func @transform_1(%arg0: i32) -> (i32, i32) {
    %c0_i32 = arith.constant 0 : i32
    %c0_i32_0 = arith.constant 0 : i32
    return %arg0, %c0_i32 : i32, i32
  }
}

</mosaic_0001>

<bundles_post_ra>
// kernel: tpu_custom_call.1
= control target key start
LH: loop header
LB: loop body
LE: loop exit
PB: predicated region body
PF: predicated region fallthrough
CT: control target
= control target key end

     0   :  { %6 = vsyncpa [#allocation3], 0  ;;  %s126_s0 = inlined_call_operand.hbm [shape: f32[1,2048], index: 0, kind: input, shape index: {}]   ;;  %s127_s1 = inlined_call_operand.hbm [shape: f32[1,2048], index: 1, kind: output, shape index: {}]  }
   0x1   :  { %7 = vsyncpa [#allocation4], 0  ;;  %s90_s6 = smov [#allocation2]   ;;  %s42_s10 = scalar_lea.hbm %s126_s0, 256 }
   0x2   :  { %s14_s7 = sshll.u32 %s90_s6, 4  ;;  %p43_p0 = scmp.ne.s32.totalorder %s126_s0, %s42_s10  ;;  %s15_s7 = int_to_ptr.vmem [resolvable:$true] %s14_s7 }
   0x3   :  { %p46_p1 = scmp.lt.u32.totalorder %s42_s10, %s126_s0 }
   0x5   :  { %p48_p2 = pnand %p46_p1, %p43_p0 }
   0x7   :  { %51 = shalt.err (!%p48_p2)
}
   0x8   :  { %s52_s15 = scalar_lea.vmem %s15_s7, 256  ;;  %p57_p4 = scmp.lt.s32.totalorder %s15_s7, %s15_s7 }
   0x9   :  { %p53_p3 = scmp.ne.s32.totalorder %s15_s7, %s52_s15  ;;  %p58_p5 = scmp.lt.s32.totalorder %s52_s15, %s52_s15 }
   0xb   :  { %p59_p6 = por %p58_p5, %p57_p4 }
   0xd   :  { %p60_p7 = pnand %p59_p6, %p53_p3 }
   0xf   :  { %63 = shalt.err (!%p60_p7)
}
  0x10   :  { %17 = dma.hbm_to_vmem [thread:$0]  %s126_s0, 256, %s15_s7, [#allocation3]  }
  0x11   :  { %86 = dma.done.wait [#allocation3], 256  }
  0x12   :  { %87 = vsyncadd [#allocation3], 4294967040  ;;  %s91_s18 = smov [#allocation5]   ;;  %v21_v0 = vld [vmem:[#allocation2] sm:$0xff]  ;;  %v22_v1 = vld [vmem:[#allocation2 + $0x8] sm:$0xff] }
  0x13   :  { %s31_s19 = sshll.u32 %s91_s18, 4  ;;  %23 = vst [vmem:[#allocation5] sm:$0xff] %v21_v0  ;;  %24 = vst [vmem:[#allocation5 + $0x8] sm:$0xff] %v22_v1  ;;  %s32_s19 = int_to_ptr.vmem [resolvable:$true] %s31_s19 }
  0x14   :  { %s64_s20 = scalar_lea.vmem %s32_s19, 256  ;;  %p69_p9 = scmp.lt.s32.totalorder %s32_s19, %s32_s19 }
  0x15   :  { %p65_p8 = scmp.ne.s32.totalorder %s32_s19, %s64_s20  ;;  %p70_p10 = scmp.lt.s32.totalorder %s64_s20, %s64_s20 }
  0x17   :  { %p71_p11 = por %p70_p10, %p69_p9 }
  0x19   :  { %p72_p12 = pnand %p71_p11, %p65_p8 }
  0x1b   :  { %75 = shalt.err (!%p72_p12)
}
  0x1c   :  { %s76_s0 = scalar_lea.hbm %s127_s1, 256 }
  0x1d   :  { %p77_p13 = scmp.ne.s32.totalorder %s127_s1, %s76_s0  ;;  %p80_p0 = scmp.lt.u32.totalorder %s76_s0, %s127_s1 }
  0x1f   :  { %p82_p1 = pnand %p80_p0, %p77_p13 }
  0x21   :  { %85 = shalt.err (!%p82_p1)
}
  0x22   :  { %34 = dma.vmem_to_hbm [thread:$0]  %s32_s19, 256, %s127_s1, [#allocation4]  }
  0x23   :  { %88 = dma.done.wait [#allocation4], 256  }
  0x24   :  { %89 = vsyncadd [#allocation4], 4294967040 }
  0x25   :  { %38 = vsyncpa [#allocation3], 1 }
  0x26   :  { %39 = vsyncpa [#allocation4], 1 }

</bundles_post_ra>
